<compile_context>
chip_gen: v7x
topology: tpu7x:2x2x1
jax: 0.10.0
libtpu: 0.0.40
codegen_flags: <defaults>
</compile_context>

<pallas_src>
import jax
import jax.numpy as jnp
from jax.experimental import pallas as pl
from jax.experimental.pallas import tpu as pltpu


def dnn_regression_kernel(x_ref, w1_ref, b1_ref, w2_ref, b2_ref,
                          w3_ref, b3_ref, o_ref):
    # x: (TB, D_in) bf16, w1: (D_in, H1) bf16, b1: (1, H1) f32
    # w2: (H1, H2) bf16,  b2: (1, H2) f32
    # w3: (1, H2)  bf16 (transposed output row), b3: (1, 1) f32
    # fc1 + ReLU  (MXU, f32 accumulation)
    h = jnp.dot(x_ref[...], w1_ref[...], preferred_element_type=jnp.float32)
    h = jnp.maximum(h + b1_ref[...], 0.0)
    # dropout(p=0.2) -> identity in eval mode

    # fc2 + ReLU
    h = jnp.dot(h.astype(jnp.bfloat16), w2_ref[...],
                preferred_element_type=jnp.float32)
    h = jnp.maximum(h + b2_ref[...], 0.0)
    # dropout(p=0.2) -> identity in eval mode

    # fc3 (output width 1): VPU multiply + cross-lane reduction instead of an
    # (H2, 1) MXU matmul.
    w3_row = w3_ref[...].astype(jnp.float32)                 # (1, H2)
    out = jnp.sum(h * w3_row, axis=-1, keepdims=True)        # (TB, 1) f32
    o_ref[...] = out + b3_ref[...]


def dnn_regression_forward(x, w1, b1, w2, b2, w3_row, b3, *, block_b=128):
    """x: (B, D_in). Weights in bf16 (w3_row is the (1, H2) transposed output
    weight), biases in f32. Returns (B, 1) f32."""
    B, d_in = x.shape
    h1 = w1.shape[1]
    h2 = w2.shape[1]

    # Pad the batch to a multiple of the tile; padded rows are discarded.
    n_blocks = pl.cdiv(B, block_b)
    Bp = n_blocks * block_b
    if Bp != B:
        x = jnp.pad(x, ((0, Bp - B), (0, 0)))

    out = pl.pallas_call(
        dnn_regression_kernel,
        out_shape=jax.ShapeDtypeStruct((Bp, 1), jnp.float32),
        grid=(n_blocks,),
        in_specs=[
            pl.BlockSpec((block_b, d_in), lambda i: (i, 0)),   # x tile (pipelined)
            pl.BlockSpec((d_in, h1), lambda i: (0, 0)),        # w1 (VMEM-resident)
            pl.BlockSpec((1, h1), lambda i: (0, 0)),           # b1
            pl.BlockSpec((h1, h2), lambda i: (0, 0)),          # w2
            pl.BlockSpec((1, h2), lambda i: (0, 0)),           # b2
            pl.BlockSpec((1, h2), lambda i: (0, 0)),           # w3 (row)
            pl.BlockSpec((1, 1), lambda i: (0, 0)),            # b3
        ],
        out_specs=pl.BlockSpec((block_b, 1), lambda i: (i, 0)),
        compiler_params=pltpu.CompilerParams(
            dimension_semantics=("parallel",),        # megacore on v7x
            vmem_limit_bytes=32 * 1024 * 1024,        # explicit scoped budget
        ),
    )(x, w1, b1, w2, b2, w3_row, b3)
    return out[:B]


def init_params(key, input_size, hidden_size1, hidden_size2):
    """Mimics nn.Linear's uniform(-1/sqrt(fan_in), 1/sqrt(fan_in)) init (f32)."""
    ks = jax.random.split(key, 6)

    def linear(kw, kb, fan_in, fan_out):
        bound = 1.0 / jnp.sqrt(fan_in)
        w = jax.random.uniform(kw, (fan_in, fan_out), jnp.float32, -bound, bound)
        b = jax.random.uniform(kb, (1, fan_out), jnp.float32, -bound, bound)
        return w, b

    w1, b1 = linear(ks[0], ks[1], input_size, hidden_size1)
    w2, b2 = linear(ks[2], ks[3], hidden_size1, hidden_size2)
    w3, b3 = linear(ks[4], ks[5], hidden_size2, 1)
    w3_row = w3.T                                    # (1, H2): lane-dense row
    b3 = b3.reshape(1, 1)
    return w1, b1, w2, b2, w3_row, b3


def reference_forward(x, w1, b1, w2, b2, w3_row, b3):
    h = jnp.maximum(x @ w1 + b1, 0.0)
    h = jnp.maximum(h @ w2 + b2, 0.0)
    return jnp.sum(h * w3_row, axis=-1, keepdims=True) + b3


if __name__ == "__main__":
    batch, input_size, hidden_size1, hidden_size2 = 200, 16, 32, 32

    key = jax.random.PRNGKey(0)
    kx, kp = jax.random.split(key)
    x_f32 = jax.random.normal(kx, (batch, input_size), jnp.float32)
    w1, b1, w2, b2, w3_row, b3 = init_params(kp, input_size,
                                             hidden_size1, hidden_size2)

    # bf16 storage for MXU inputs, f32 biases.
    x_bf16 = x_f32.astype(jnp.bfloat16)
    w1_bf16 = w1.astype(jnp.bfloat16)
    w2_bf16 = w2.astype(jnp.bfloat16)
    w3_bf16 = w3_row.astype(jnp.bfloat16)

    out = dnn_regression_forward(x_bf16, w1_bf16, b1, w2_bf16, b2, w3_bf16, b3,
                                 block_b=128)
    out = jax.block_until_ready(out)

    # Reference with the same bf16-rounded inputs (f32 math) -> tight tolerance.
    ref = reference_forward(x_bf16.astype(jnp.float32),
                            w1_bf16.astype(jnp.float32), b1,
                            w2_bf16.astype(jnp.float32), b2,
                            w3_bf16.astype(jnp.float32), b3)

    assert out.shape == (batch, 1)
    assert jnp.allclose(out, ref, atol=1e-3, rtol=1e-3)

    print("KERNEL_OK")
</pallas_src>

<mosaic_0001>
module attributes {stable_mosaic.version = 11 : i64} {
  func.func @dnn_regression_kernel(%arg0: i32, %arg1: memref<128x16xbf16, #tpu.memory_space<vmem>>, %arg2: memref<16x32xbf16, #tpu.memory_space<vmem>>, %arg3: memref<1x32xf32, #tpu.memory_space<vmem>>, %arg4: memref<32x32xbf16, #tpu.memory_space<vmem>>, %arg5: memref<1x32xf32, #tpu.memory_space<vmem>>, %arg6: memref<1x32xbf16, #tpu.memory_space<vmem>>, %arg7: memref<1x1xf32, #tpu.memory_space<vmem>>, %arg8: memref<128x1xf32, #tpu.memory_space<vmem>>) attributes {dimension_semantics = [#tpu.dimension_semantics<parallel>], iteration_bounds = array<i64: 2>, scalar_prefetch = 0 : i64, scratch_operands = 0 : i64, tpu.core_type = #tpu.core_type<tc>, window_params = [{transform_indices = @transform_0, window_bounds = array<i64: 128, 16>}, {pipeline_mode = #tpu.pipeline_mode<synchronous>, transform_indices = @transform_1, window_bounds = array<i64: 16, 32>}, {pipeline_mode = #tpu.pipeline_mode<synchronous>, transform_indices = @transform_2, window_bounds = array<i64: 1, 32>}, {pipeline_mode = #tpu.pipeline_mode<synchronous>, transform_indices = @transform_3, window_bounds = array<i64: 32, 32>}, {pipeline_mode = #tpu.pipeline_mode<synchronous>, transform_indices = @transform_4, window_bounds = array<i64: 1, 32>}, {pipeline_mode = #tpu.pipeline_mode<synchronous>, transform_indices = @transform_5, window_bounds = array<i64: 1, 32>}, {pipeline_mode = #tpu.pipeline_mode<synchronous>, transform_indices = @transform_6, window_bounds = array<i64: 1, 1>}, {transform_indices = @transform_7, window_bounds = array<i64: 128, 1>}]} {
    %c0 = arith.constant 0 : index
    %c0_0 = arith.constant 0 : index
    %0 = vector.load %arg1[%c0, %c0_0] : memref<128x16xbf16, #tpu.memory_space<vmem>>, vector<128x16xbf16>
    %c0_1 = arith.constant 0 : index
    %c0_2 = arith.constant 0 : index
    %1 = vector.load %arg2[%c0_1, %c0_2] : memref<16x32xbf16, #tpu.memory_space<vmem>>, vector<16x32xbf16>
    %cst = arith.constant dense<0.000000e+00> : vector<128x32xf32>
    %2 = tpu.matmul %0, %1, %cst {dimension_numbers = #tpu.dot_dimension_numbers<[1], [0], [0], [1], [0, 0, 1, 1], [], []>} : vector<128x16xbf16>, vector<16x32xbf16>, vector<128x32xf32> -> vector<128x32xf32>
    %c0_3 = arith.constant 0 : index
    %c0_4 = arith.constant 0 : index
    %3 = vector.load %arg3[%c0_3, %c0_4] : memref<1x32xf32, #tpu.memory_space<vmem>>, vector<1x32xf32>
    %4 = vector.broadcast %3 : vector<1x32xf32> to vector<128x32xf32>
    %5 = arith.addf %2, %4 : vector<128x32xf32>
    %cst_5 = arith.constant 0.000000e+00 : f32
    %6 = vector.broadcast %cst_5 : f32 to vector<128x32xf32>
    %7 = arith.maximumf %5, %6 : vector<128x32xf32>
    %8 = arith.truncf %7 : vector<128x32xf32> to vector<128x32xbf16>
    %c0_6 = arith.constant 0 : index
    %c0_7 = arith.constant 0 : index
    %9 = vector.load %arg4[%c0_6, %c0_7] : memref<32x32xbf16, #tpu.memory_space<vmem>>, vector<32x32xbf16>
    %cst_8 = arith.constant dense<0.000000e+00> : vector<128x32xf32>
    %10 = tpu.matmul %8, %9, %cst_8 {dimension_numbers = #tpu.dot_dimension_numbers<[1], [0], [0], [1], [0, 0, 1, 1], [], []>} : vector<128x32xbf16>, vector<32x32xbf16>, vector<128x32xf32> -> vector<128x32xf32>
    %c0_9 = arith.constant 0 : index
    %c0_10 = arith.constant 0 : index
    %11 = vector.load %arg5[%c0_9, %c0_10] : memref<1x32xf32, #tpu.memory_space<vmem>>, vector<1x32xf32>
    %12 = vector.broadcast %11 : vector<1x32xf32> to vector<128x32xf32>
    %13 = arith.addf %10, %12 : vector<128x32xf32>
    %cst_11 = arith.constant 0.000000e+00 : f32
    %14 = vector.broadcast %cst_11 : f32 to vector<128x32xf32>
    %15 = arith.maximumf %13, %14 : vector<128x32xf32>
    %c0_12 = arith.constant 0 : index
    %c0_13 = arith.constant 0 : index
    %16 = vector.load %arg6[%c0_12, %c0_13] : memref<1x32xbf16, #tpu.memory_space<vmem>>, vector<1x32xbf16>
    %17 = arith.extf %16 : vector<1x32xbf16> to vector<1x32xf32>
    %18 = vector.broadcast %17 : vector<1x32xf32> to vector<128x32xf32>
    %19 = arith.mulf %15, %18 : vector<128x32xf32>
    %cst_14 = arith.constant dense<0.000000e+00> : vector<128xf32>
    %20 = vector.multi_reduction <add>, %19, %cst_14 [1] : vector<128x32xf32> to vector<128xf32>
    %21 = vector.shape_cast %20 : vector<128xf32> to vector<128x1xf32>
    %c0_15 = arith.constant 0 : index
    %c0_16 = arith.constant 0 : index
    %22 = vector.load %arg7[%c0_15, %c0_16] : memref<1x1xf32, #tpu.memory_space<vmem>>, vector<1x1xf32>
    %23 = vector.broadcast %22 : vector<1x1xf32> to vector<128x1xf32>
    %24 = arith.addf %21, %23 : vector<128x1xf32>
    %c0_17 = arith.constant 0 : index
    %c0_18 = arith.constant 0 : index
    %25 = vector.load %arg8[%c0_17, %c0_18] : memref<128x1xf32, #tpu.memory_space<vmem>>, vector<128x1xf32>
    tpu.vector_store %arg8[%c0_17, %c0_18], %24 {strides = array<i32>} : memref<128x1xf32, #tpu.memory_space<vmem>>, vector<128x1xf32>,
    return
  }
  func.func @transform_0(%arg0: i32) -> (i32, i32) {
    %c0_i32 = arith.constant 0 : i32
    %c0_i32_0 = arith.constant 0 : i32
    return %arg0, %c0_i32 : i32, i32
  }
  func.func @transform_1(%arg0: i32) -> (i32, i32) {
    %c0_i32 = arith.constant 0 : i32
    %c0_i32_0 = arith.constant 0 : i32
    %c0_i32_1 = arith.constant 0 : i32
    return %c0_i32, %c0_i32_0 : i32, i32
  }
  func.func @transform_2(%arg0: i32) -> (i32, i32) {
    %c0_i32 = arith.constant 0 : i32
    %c0_i32_0 = arith.constant 0 : i32
    %c0_i32_1 = arith.constant 0 : i32
    return %c0_i32, %c0_i32_0 : i32, i32
  }
  func.func @transform_3(%arg0: i32) -> (i32, i32) {
    %c0_i32 = arith.constant 0 : i32
    %c0_i32_0 = arith.constant 0 : i32
    %c0_i32_1 = arith.constant 0 : i32
    return %c0_i32, %c0_i32_0 : i32, i32
  }
  func.func @transform_4(%arg0: i32) -> (i32, i32) {
    %c0_i32 = arith.constant 0 : i32
    %c0_i32_0 = arith.constant 0 : i32
    %c0_i32_1 = arith.constant 0 : i32
    return %c0_i32, %c0_i32_0 : i32, i32
  }
  func.func @transform_5(%arg0: i32) -> (i32, i32) {
    %c0_i32 = arith.constant 0 : i32
    %c0_i32_0 = arith.constant 0 : i32
    %c0_i32_1 = arith.constant 0 : i32
    return %c0_i32, %c0_i32_0 : i32, i32
  }
  func.func @transform_6(%arg0: i32) -> (i32, i32) {
    %c0_i32 = arith.constant 0 : i32
    %c0_i32_0 = arith.constant 0 : i32
    %c0_i32_1 = arith.constant 0 : i32
    return %c0_i32, %c0_i32_0 : i32, i32
  }
  func.func @transform_7(%arg0: i32) -> (i32, i32) {
    %c0_i32 = arith.constant 0 : i32
    %c0_i32_0 = arith.constant 0 : i32
    return %arg0, %c0_i32 : i32, i32
  }
}

</mosaic_0001>

<bundles_post_ra>
// kernel: tpu_custom_call.1
= control target key start
LH: loop header
LB: loop body
LE: loop exit
PB: predicated region body
PF: predicated region fallthrough
CT: control target
= control target key end

     0   :  { %s997_s26 = smov 0   ;;  %s1138_s0 = inlined_call_operand.vmem [shape: bf16[256,16], index: 0, kind: input, shape index: {}]   ;;  %s1139_s1 = inlined_call_operand.vmem [shape: bf16[16,32], index: 1, kind: input, shape index: {}]   ;;  %s1140_s2 = inlined_call_operand.vmem [shape: f32[1,32], index: 2, kind: input, shape index: {}]   ;;  %s1141_s3 = inlined_call_operand.vmem [shape: bf16[32,32], index: 3, kind: input, shape index: {}]   ;;  %s1142_s4 = inlined_call_operand.vmem [shape: f32[1,32], index: 4, kind: input, shape index: {}]   ;;  %s1143_s5 = inlined_call_operand.vmem [shape: bf16[1,32], index: 5, kind: input, shape index: {}]   ;;  %s1144_s6 = inlined_call_operand.<no memory space> [shape: f32[1,1], index: 6, kind: input, shape index: {}]   ;;  %s1145_s7 = inlined_call_operand.vmem [shape: f32[256,1], index: 7, kind: output, shape index: {}]  }
   0x1   :  { %v12_v0 = vstv %s1144_s6 }
   0x2   :  { %13 = vst [vmem:[#allocation2] sm:$0x1] %v12_v0 }
   0x3 LB: > { %s829_s27 = sadd.s32 4294967295, %s952_s26   ;;  %p833_p0 = scmp.ge.s32.totalorder %s952_s26, 1  ;;  %s952_s26 = sphi %s997_s26, %s19_s26  }
   0x4   : > { %p240_p1 = scmp.lt.s32.totalorder %s952_s26, 3 }
   0x6   : > { %p241_p2 = pnand %p833_p0, %p240_p1 }
   0x7   : > { %v935_v1 = vld [vmem:[%s1139_s1] sm:$0xff] (!%p241_p2)   ;;  %s834_s6 = sshll.u32 (!%p241_p2), %s829_s27, 4  ;;  %vm356_vm0 = vcmask (!%p241_p2), 130048   ;;  %v945_v11 = vld [vmem:[%s1141_s3 + $0x8] sm:$0xff] (!%p241_p2)   ;;  %vm525_vm1 = vcmask (!%p241_p2), 261120   ;;  %vm756_vm2 = vcmask (!%p241_p2), 7168  }
   0x8   : > { %244 = sbr.rel (%p241_p2) target bundleno = 637 (0x27d), region = 48  ;;  %p273_p3 = scmp.lt.s32.totalorder (!%p241_p2), %s834_s6, 31  ;;  %889 = vmatprep.subr.bf16.mxu0 (!%p241_p2), %v935_v1  ;;  %v944_v10 = vld [vmem:[%s1141_s3] sm:$0xff] (!%p241_p2)  }
   0x9   : > { %890 = vmatpush3.bf16.msra.mxu0 (!%p241_p2), %v935_v1  ;;  %907 = vmatprep.subr.bf16.mxu1 (!%p241_p2), %v944_v10  ;;  %v838_v12 = vld [vmem:[%s1140_s2] ss:$0 sm:$0xff] (!%p241_p2) }
   0xa   : > { %908 = vmatpush3.bf16.msra.mxu1 (!%p241_p2), %v944_v10  ;;  %v1045_v10 = vld [vmem:[%s1142_s4] ss:$0 sm:$0xff] (!%p241_p2) }
   0xb   : > { %909 = vmatprep.subr.bf16.mxu1 (!%p241_p2), %v945_v11 }
   0xe   : > { %910 = vmatpush3.bf16.msra.mxu1 (!%p241_p2), %v945_v11 }
   0xf   : > { %s1147_s6 = smov (!%p273_p3, %s834_s6), 31 }
  0x10   : > { %s835_s30 = sshll.u32 %s1147_s6, 2  ;;  %s837_s21 = sshll.u32 %s1147_s6, 3 }
  0x11   : > { %s276_s10 = scalar_lea.vmem %s1138_s0, %s835_s30  ;;  %s1101_s24 = scalar_lea.vmem %s1145_s7, %s837_s21 }
  0x12   : > { %v936_v2 = vld [vmem:[%s276_s10] sm:$0xff]   ;;  %v937_v3 = vld [vmem:[%s276_s10 + $0x8] sm:$0xff]   ;;  %v938_v4 = vld [vmem:[%s276_s10 + $0x10] sm:$0xff]  }
  0x13   : > { %891 = vmatprep.mubr.msk.bf16.mxu0 %vm356_vm0, %v936_v2  ;;  %v939_v5 = vld [vmem:[%s276_s10 + $0x18] sm:$0xff]   ;;  %v940_v6 = vld [vmem:[%s276_s10 + $0x20] sm:$0xff]   ;;  %v941_v7 = vld [vmem:[%s276_s10 + $0x28] sm:$0xff]  }
  0x14   : > { %892 = vmatmul.mubr.msk.bf16.vlgmr.msra.gmra.mrb[0].mxu0 %vm356_vm0, %v937_v3  ;;  %v942_v8 = vld [vmem:[%s276_s10 + $0x30] sm:$0xff]   ;;  %v943_v9 = vld [vmem:[%s276_s10 + $0x38] sm:$0xff]  }
  0x15   : > { %895 = vmatprep.mubr.msk.bf16.mxu0 %vm356_vm0, %v938_v4 }
  0x1c   : > { %896 = vmatmul.mubr.msk.bf16.gmra.mrb[4].mxu0 %vm356_vm0, %v939_v5  ;;  %v665_v5 = vlaneseq }
  0x1d   : > { %899 = vmatprep.mubr.msk.bf16.mxu0 %vm356_vm0, %v940_v6 }
  0x1e   : > { %v666_v6 = vshrl.u32 %v665_v5, 7 }
  0x24   : > { %900 = vmatmul.mubr.msk.bf16.gmra.mrb[8].mxu0 %vm356_vm0, %v941_v7  ;;  %v663_v7 = vld [vmem:[%s1143_s5] sm:$0x1] }
  0x25   : > { %903 = vmatprep.mubr.msk.bf16.mxu0 %vm356_vm0, %v942_v8  ;;  %v664_v8 = vunpack.c.l.bf16 %v663_v7 }
  0x2c   : > { %904 = vmatmul.mubr.msk.bf16.gmra.mrb[12].mxu0 %vm356_vm0, %v943_v9  ;;  %v667_v9 = vsub.s32 0, %v666_v6 }
  0xe7   : > { %v893_v13 = vpop.f32.mrb[0].mxu0 }
  0xe8   : > { %v424_v14 = vadd.f32 %v893_v13, %v838_v12  ;;  %v415_v15 = vpop.f32.mrb[1].mxu0 }
  0xe9   : > { %v416_v16 = vadd.f32 %v838_v12, %v415_v15  ;;  %v894_v17 = vpop.f32.mrb[2].mxu0 }
  0xea   : > { %v427_v18 = vadd.f32 %v894_v17, %v838_v12  ;;  %v418_v19 = vpop.f32.mrb[3].mxu0  ;;  %v480_v21 = vmax.f32 %v424_v14, 0.0  ;;  %v1048_v14 = vrot.slane %v664_v8, %v667_v9 }
  0xeb   : > { %v419_v20 = vadd.f32 %v838_v12, %v418_v19  ;;  %v478_v23 = vmax.f32 %v416_v16, 0.0 }
  0xec   : > { %v481_v22 = vmax.f32 %v427_v18, 0.0 }
  0xed   : > { %v479_v24 = vmax.f32 %v419_v20, 0.0 }
  0xee   : > { %v495_v25 = vpack.c.bf16 %v481_v22, %v480_v21 }
  0xef   : > { %v897_v26 = vpop.f32.mrb[4].mxu0  ;;  %v494_v27 = vpack.c.bf16 %v479_v24, %v478_v23 }
  0xf0   : > { %v440_v28 = vadd.f32 %v897_v26, %v838_v12  ;;  %v431_v29 = vpop.f32.mrb[5].mxu0 }
  0xf1   : > { %v432_v30 = vadd.f32 %v838_v12, %v431_v29  ;;  %v898_v31 = vpop.f32.mrb[6].mxu0  ;;  %911 = vmatprep.mubr.msk.bf16.mxu1 %vm525_vm1, %v494_v27 }
  0xf2   : > { %v443_v32 = vadd.f32 %v898_v31, %v838_v12  ;;  %v434_v33 = vpop.f32.mrb[7].mxu0  ;;  %912 = vmatmul.mubr.msk.bf16.vlgmr.msra.gmra.mrb[0].mxu1 %vm525_vm1, %v495_v25  ;;  %v484_v35 = vmax.f32 %v440_v28, 0.0 }
  0xf3   : > { %v435_v34 = vadd.f32 %v838_v12, %v434_v33  ;;  %v482_v37 = vmax.f32 %v432_v30, 0.0 }
  0xf4   : > { %v485_v36 = vmax.f32 %v443_v32, 0.0 }
  0xf5   : > { %v483_v38 = vmax.f32 %v435_v34, 0.0 }
  0xf6   : > { %v497_v39 = vpack.c.bf16 %v485_v36, %v484_v35 }
  0xf7   : > { %v496_v40 = vpack.c.bf16 %v483_v38, %v482_v37  ;;  %v901_v41 = vpop.f32.mrb[8].mxu0 }
  0xf8   : > { %v456_v42 = vadd.f32 %v901_v41, %v838_v12  ;;  %v447_v43 = vpop.f32.mrb[9].mxu0 }
  0xf9   : > { %v448_v44 = vadd.f32 %v838_v12, %v447_v43  ;;  %v902_v45 = vpop.f32.mrb[10].mxu0  ;;  %915 = vmatprep.mubr.msk.bf16.mxu1 %vm525_vm1, %v496_v40 }
  0xfa   : > { %v459_v46 = vadd.f32 %v902_v45, %v838_v12  ;;  %v450_v47 = vpop.f32.mrb[11].mxu0  ;;  %916 = vmatmul.mubr.msk.bf16.gmra.mrb[4].mxu1 %vm525_vm1, %v497_v39  ;;  %v488_v49 = vmax.f32 %v456_v42, 0.0 }
  0xfb   : > { %v451_v48 = vadd.f32 %v838_v12, %v450_v47  ;;  %v486_v51 = vmax.f32 %v448_v44, 0.0 }
  0xfc   : > { %v489_v50 = vmax.f32 %v459_v46, 0.0 }
  0xfd   : > { %v487_v52 = vmax.f32 %v451_v48, 0.0 }
  0xfe   : > { %v499_v53 = vpack.c.bf16 %v489_v50, %v488_v49 }
  0xff   : > { %v498_v54 = vpack.c.bf16 %v487_v52, %v486_v51  ;;  %v905_v55 = vpop.f32.mrb[12].mxu0 }
 0x100   : > { %v472_v56 = vadd.f32 %v905_v55, %v838_v12  ;;  %v463_v57 = vpop.f32.mrb[13].mxu0 }
 0x101   : > { %v464_v58 = vadd.f32 %v838_v12, %v463_v57  ;;  %v906_v59 = vpop.f32.mrb[14].mxu0  ;;  %919 = vmatprep.mubr.msk.bf16.mxu1 %vm525_vm1, %v498_v54 }
 0x102   : > { %v475_v60 = vadd.f32 %v906_v59, %v838_v12  ;;  %v466_v61 = vpop.f32.mrb[15].mxu0  ;;  %920 = vmatmul.mubr.msk.bf16.gmra.mrb[8].mxu1 %vm525_vm1, %v499_v53  ;;  %v492_v63 = vmax.f32 %v472_v56, 0.0 }
 0x103   : > { %v467_v62 = vadd.f32 %v838_v12, %v466_v61  ;;  %v490_v1 = vmax.f32 %v464_v58, 0.0 }
 0x104   : > { %v493_v0 = vmax.f32 %v475_v60, 0.0 }
 0x105   : > { %v491_v2 = vmax.f32 %v467_v62, 0.0 }
 0x106   : > { %v501_v3 = vpack.c.bf16 %v493_v0, %v492_v63 }
 0x107   : > { %v500_v4 = vpack.c.bf16 %v491_v2, %v490_v1 }
 0x109   : > { %923 = vmatprep.mubr.msk.bf16.mxu1 %vm525_vm1, %v500_v4 }
 0x10a   : > { %924 = vmatmul.mubr.msk.bf16.gmra.mrb[12].mxu1 %vm525_vm1, %v501_v3 }
 0x1c5   : > { %v913_v11 = vpop.f32.mrb[0].mxu1 }
 0x1c6   : > { %v593_v12 = vadd.f32 %v913_v11, %v1045_v10  ;;  %v584_v13 = vpop.f32.mrb[1].mxu1 }
 0x1c7   : > { %v585_v15 = vadd.f32 %v1045_v10, %v584_v13  ;;  %v914_v16 = vpop.f32.mrb[2].mxu1 }
 0x1c8   : > { %v649_v17 = vmax.f32 %v593_v12, 0.0  ;;  %v596_v18 = vadd.f32 %v914_v16, %v1045_v10  ;;  %v587_v19 = vpop.f32.mrb[3].mxu1 }
 0x1c9   : > { %v647_v20 = vmax.f32 %v585_v15, 0.0  ;;  %v588_v21 = vadd.f32 %v1045_v10, %v587_v19 }
 0x1ca   : > { %v650_v22 = vmax.f32 %v596_v18, 0.0  ;;  %v671_v23 = vmul.f32 %v1048_v14, %v649_v17 }
 0x1cb   : > { %v648_v24 = vmax.f32 %v588_v21, 0.0  ;;  %v669_v25 = vmul.f32 %v1048_v14, %v647_v20 }
 0x1cc   : > { %v691_v26 = vsel %vm525_vm1, %v671_v23, 0.0  ;;  %v672_v27 = vmul.f32 %v1048_v14, %v650_v22 }
 0x1cd   : > { %692 = vadd.xlane.f32.xlu1 %v691_v26  ;;  %v917_v28 = vpop.f32.mrb[4].mxu1  ;;  %v685_v29 = vsel %vm525_vm1, %v669_v25, 0.0  ;;  %v670_v30 = vmul.f32 %v1048_v14, %v648_v24 }
 0x1ce   : > { %v609_v31 = vadd.f32 %v917_v28, %v1045_v10  ;;  %v600_v32 = vpop.f32.mrb[5].mxu1  ;;  %686 = vadd.xlane.f32.xlu0 %v685_v29  ;;  %v694_v38 = vsel %vm525_vm1, %v672_v27, 0.0  ;;  %v867_v29 = vld [vmem:[#allocation2] ss:$0 sm:$0xff] }
 0x1cf   : > { %v601_v33 = vadd.f32 %v1045_v10, %v600_v32  ;;  %v918_v34 = vpop.f32.mrb[6].mxu1  ;;  %v688_v41 = vsel %vm525_vm1, %v670_v30, 0.0 }
 0x1d0   : > { %v653_v35 = vmax.f32 %v609_v31, 0.0  ;;  %v612_v36 = vadd.f32 %v918_v34, %v1045_v10  ;;  %v603_v37 = vpop.f32.mrb[7].mxu1 }
 0x1d1   : > { %v651_v39 = vmax.f32 %v601_v33, 0.0  ;;  %v604_v40 = vadd.f32 %v1045_v10, %v603_v37  ;;  %695 = vadd.xlane.f32.xlu1 %v694_v38 }
 0x1d2   : > { %v654_v42 = vmax.f32 %v612_v36, 0.0  ;;  %689 = vadd.xlane.f32.xlu0 %v688_v41  ;;  %v675_v43 = vmul.f32 %v1048_v14, %v653_v35 }
 0x1d3   : > { %v652_v44 = vmax.f32 %v604_v40, 0.0  ;;  %v673_v48 = vmul.f32 %v1048_v14, %v651_v39 }
 0x1d4   : > { %v703_v45 = vsel %vm525_vm1, %v675_v43, 0.0  ;;  %v676_v46 = vmul.f32 %v1048_v14, %v654_v42 }
 0x1d5   : > { %v921_v47 = vpop.f32.mrb[8].mxu1  ;;  %v674_v52 = vmul.f32 %v1048_v14, %v652_v44  ;;  %v697_v60 = vsel %vm525_vm1, %v673_v48, 0.0 }
 0x1d6   : > { %v625_v49 = vadd.f32 %v921_v47, %v1045_v10  ;;  %v616_v50 = vpop.f32.mrb[9].mxu1  ;;  %704 = vadd.xlane.f32.xlu0 %v703_v45  ;;  %v706_v51 = vsel %vm525_vm1, %v676_v46, 0.0 }
 0x1d7   : > { %v617_v53 = vadd.f32 %v1045_v10, %v616_v50  ;;  %707 = vadd.xlane.f32.xlu1 %v706_v51  ;;  %v922_v54 = vpop.f32.mrb[10].mxu1  ;;  %v700_v62 = vsel %vm525_vm1, %v674_v52, 0.0 }
 0x1d8   : > { %v657_v55 = vmax.f32 %v625_v49, 0.0  ;;  %v628_v56 = vadd.f32 %v922_v54, %v1045_v10  ;;  %v619_v57 = vpop.f32.mrb[11].mxu1 }
 0x1d9   : > { %v655_v58 = vmax.f32 %v617_v53, 0.0  ;;  %v620_v59 = vadd.f32 %v1045_v10, %v619_v57 }
 0x1da   : > { %v658_v61 = vmax.f32 %v628_v56, 0.0  ;;  %698 = vadd.xlane.f32.xlu0 %v697_v60  ;;  %v679_v63 = vmul.f32 %v1048_v14, %v657_v55 }
 0x1db   : > { %v656_v0 = vmax.f32 %v620_v59, 0.0  ;;  %701 = vadd.xlane.f32.xlu1 %v700_v62  ;;  %v677_v4 = vmul.f32 %v1048_v14, %v655_v58 }
 0x1dc   : > { %v715_v1 = vsel %vm525_vm1, %v679_v63, 0.0  ;;  %v680_v2 = vmul.f32 %v1048_v14, %v658_v61 }
 0x1dd   : > { %v925_v3 = vpop.f32.mrb[12].mxu1  ;;  %v678_v8 = vmul.f32 %v1048_v14, %v656_v0  ;;  %v709_v18 = vsel %vm525_vm1, %v677_v4, 0.0 }
 0x1de   : > { %v641_v5 = vadd.f32 %v925_v3, %v1045_v10  ;;  %v632_v6 = vpop.f32.mrb[13].mxu1  ;;  %716 = vadd.xlane.f32.xlu0 %v715_v1  ;;  %v718_v7 = vsel %vm525_vm1, %v680_v2, 0.0 }
 0x1df   : > { %v633_v9 = vadd.f32 %v1045_v10, %v632_v6  ;;  %v926_v11 = vpop.f32.mrb[14].mxu1  ;;  %719 = vadd.xlane.f32.xlu1 %v718_v7  ;;  %v712_v19 = vsel %vm525_vm1, %v678_v8, 0.0 }
 0x1e0   : > { %v644_v12 = vadd.f32 %v926_v11, %v1045_v10  ;;  %v635_v13 = vpop.f32.mrb[15].mxu1  ;;  %v661_v15 = vmax.f32 %v641_v5, 0.0 }
 0x1e1   : > { %v659_v16 = vmax.f32 %v633_v9, 0.0  ;;  %v636_v17 = vadd.f32 %v1045_v10, %v635_v13 }
 0x1e2   : > { %710 = vadd.xlane.f32.xlu0 %v709_v18  ;;  %v662_v20 = vmax.f32 %v644_v12, 0.0  ;;  %v683_v25 = vmul.f32 %v1048_v14, %v661_v15 }
 0x1e3   : > { %v660_v21 = vmax.f32 %v636_v17, 0.0  ;;  %713 = vadd.xlane.f32.xlu1 %v712_v19  ;;  %v681_v22 = vmul.f32 %v1048_v14, %v659_v16 }
 0x1e4   : > { %v684_v26 = vmul.f32 %v1048_v14, %v662_v20  ;;  %v727_v27 = vsel %vm525_vm1, %v683_v25, 0.0 }
 0x1e5   : > { %v721_v23 = vsel %vm525_vm1, %v681_v22, 0.0  ;;  %v682_v24 = vmul.f32 %v1048_v14, %v660_v21 }
 0x1e6   : > { %722 = vadd.xlane.f32.xlu0 %v721_v23  ;;  %v730_v28 = vsel %vm525_vm1, %v684_v26, 0.0 }
 0x1e7   : > { %v724_v10 = vsel %vm525_vm1, %v682_v24, 0.0 }
 0x1e8   : > { %725 = vadd.xlane.f32.xlu1 %v724_v10 }
 0x1ea   : > { %728 = vadd.xlane.f32.xlu0 %v727_v27 }
 0x1ec   : > { %731 = vadd.xlane.f32.xlu1 %v730_v28 }
 0x25a   : > { %v693_v14 = vpop.xlane.xlu1 %692 }
 0x25b   : > { %v742_v30 = vadd.f32 %v867_v29, %v693_v14  ;;  %v687_v31 = vpop.xlane.xlu0 %686 }
 0x25c   : > { %v740_v32 = vadd.f32 %v867_v29, %v687_v31 }
 0x25d   : > { %759 = vst.msk [vmem:[%s1101_s24 + $0x10] sm:$0xff] %vm756_vm2, %v742_v30 }
 0x25e   : > { %757 = vst.msk [vmem:[%s1101_s24] sm:$0xff] %vm756_vm2, %v740_v32  ;;  %v696_v33 = vpop.xlane.xlu1 %695 }
 0x25f   : > { %v743_v34 = vadd.f32 %v867_v29, %v696_v33  ;;  %v690_v35 = vpop.xlane.xlu0 %689 }
 0x260   : > { %v741_v36 = vadd.f32 %v867_v29, %v690_v35 }
 0x261   : > { %760 = vst.msk [vmem:[%s1101_s24 + $0x18] sm:$0xff] %vm756_vm2, %v743_v34 }
 0x262   : > { %758 = vst.msk [vmem:[%s1101_s24 + $0x8] sm:$0xff] %vm756_vm2, %v741_v36 }
 0x263   : > { %v705_v37 = vpop.xlane.xlu0 %704 }
 0x264   : > { %v746_v38 = vadd.f32 %v867_v29, %v705_v37  ;;  %v708_v39 = vpop.xlane.xlu1 %707 }
 0x265   : > { %v747_v40 = vadd.f32 %v867_v29, %v708_v39 }
 0x266   : > { %763 = vst.msk [vmem:[%s1101_s24 + $0x30] sm:$0xff] %vm756_vm2, %v746_v38 }
 0x267   : > { %764 = vst.msk [vmem:[%s1101_s24 + $0x38] sm:$0xff] %vm756_vm2, %v747_v40  ;;  %v699_v41 = vpop.xlane.xlu0 %698 }
 0x268   : > { %v744_v42 = vadd.f32 %v867_v29, %v699_v41  ;;  %v702_v43 = vpop.xlane.xlu1 %701 }
 0x269   : > { %v745_v44 = vadd.f32 %v867_v29, %v702_v43 }
 0x26a   : > { %761 = vst.msk [vmem:[%s1101_s24 + $0x20] sm:$0xff] %vm756_vm2, %v744_v42 }
 0x26b   : > { %762 = vst.msk [vmem:[%s1101_s24 + $0x28] sm:$0xff] %vm756_vm2, %v745_v44  ;;  %v717_v45 = vpop.xlane.xlu0 %716 }
 0x26c   : > { %v750_v46 = vadd.f32 %v867_v29, %v717_v45  ;;  %v720_v47 = vpop.xlane.xlu1 %719 }
 0x26d   : > { %v751_v48 = vadd.f32 %v867_v29, %v720_v47 }
 0x26e   : > { %767 = vst.msk [vmem:[%s1101_s24 + $0x50] sm:$0xff] %vm756_vm2, %v750_v46 }
 0x26f   : > { %768 = vst.msk [vmem:[%s1101_s24 + $0x58] sm:$0xff] %vm756_vm2, %v751_v48  ;;  %v711_v49 = vpop.xlane.xlu0 %710 }
 0x270   : > { %v748_v50 = vadd.f32 %v867_v29, %v711_v49  ;;  %v714_v51 = vpop.xlane.xlu1 %713 }
 0x271   : > { %v749_v52 = vadd.f32 %v867_v29, %v714_v51 }
 0x272   : > { %765 = vst.msk [vmem:[%s1101_s24 + $0x40] sm:$0xff] %vm756_vm2, %v748_v50 }
 0x273   : > { %766 = vst.msk [vmem:[%s1101_s24 + $0x48] sm:$0xff] %vm756_vm2, %v749_v52  ;;  %v723_v53 = vpop.xlane.xlu0 %722 }
 0x274   : > { %v752_v54 = vadd.f32 %v867_v29, %v723_v53 }
 0x275   : > { %v726_v55 = vpop.xlane.xlu1 %725 }
 0x276   : > { %769 = vst.msk [vmem:[%s1101_s24 + $0x60] sm:$0xff] %vm756_vm2, %v752_v54  ;;  %v753_v56 = vadd.f32 %v867_v29, %v726_v55 }
 0x277   : > { %v729_v57 = vpop.xlane.xlu0 %728 }
 0x278   : > { %770 = vst.msk [vmem:[%s1101_s24 + $0x68] sm:$0xff] %vm756_vm2, %v753_v56  ;;  %v754_v58 = vadd.f32 %v867_v29, %v729_v57 }
 0x279   : > { %v732_v59 = vpop.xlane.xlu1 %731 }
 0x27a   : > { %771 = vst.msk [vmem:[%s1101_s24 + $0x70] sm:$0xff] %vm756_vm2, %v754_v58  ;;  %v755_v60 = vadd.f32 %v867_v29, %v732_v59 }
 0x27c   : > { %772 = vst.msk [vmem:[%s1101_s24 + $0x78] sm:$0xff] %vm756_vm2, %v755_v60 }
 0x27d PF: > { %s19_s26 = sadd.s32 1, %s952_s26  }
 0x27e   : > { %p16_p4 = scmp.ge.s32.totalorder %s19_s26, 4  }
 0x280   :  { %18 = sbr.rel (!%p16_p4) target bundleno = 3 (0x3), region = 78 }

</bundles_post_ra>
